<compile_context>
chip_gen: v5e
topology: v5e:2x2
jax: 0.10.0
libtpu: 0.0.40
codegen_flags: <defaults>
</compile_context>

<pallas_src>
import math
import functools

import jax
import jax.numpy as jnp
from jax.experimental import pallas as pl
from jax.experimental.pallas import tpu as pltpu


# ----------------------------------------------------------------------------
# Parameter construction (mirrors PositionalEncoding.__init__)
# ----------------------------------------------------------------------------
def make_positional_encoding_table(d_model: int, max_len: int = 5000,
                                   dtype=jnp.float32) -> jnp.ndarray:
    """Builds the (max_len, d_model) sinusoidal table, identical to the PyTorch code.

    Build it once in the model's compute dtype and cache it (avoids a per-call
    astype over (seq, d_model)).
    """
    position = jnp.arange(0, max_len, dtype=jnp.float32)[:, None]            # (max_len, 1)
    div_term = jnp.exp(
        jnp.arange(0, d_model, 2, dtype=jnp.float32) * (-math.log(10000.0) / d_model)
    )                                                                         # (ceil(d/2),)
    angles = position * div_term                                              # (max_len, ceil(d/2))
    pe = jnp.zeros((max_len, d_model), dtype=jnp.float32)
    pe = pe.at[:, 0::2].set(jnp.sin(angles))
    pe = pe.at[:, 1::2].set(jnp.cos(angles)[:, : d_model // 2])               # even d_model: full cos
    return pe.astype(dtype)


# ----------------------------------------------------------------------------
# Pallas kernels (operate on lane-dense 2-D tiles)
# ----------------------------------------------------------------------------
def _pe_add_kernel(x_ref, pe_ref, o_ref):
    # x_ref: (TILE_B, TILE_F), pe_ref: (1, TILE_F)  -> sublane broadcast add.
    o_ref[...] = x_ref[...] + pe_ref[...]


def _pe_add_dropout_kernel(x_ref, pe_ref, bits_ref, o_ref, *, threshold: int, scale: float):
    # Inverted dropout fused with the positional add.
    # keep iff bits >= threshold  (P(drop) = threshold / 2^32 ~= p)
    y = x_ref[...] + pe_ref[...]
    keep = bits_ref[...] >= jnp.uint32(threshold)
    o_ref[...] = jnp.where(keep, y * scale, jnp.zeros_like(y))


# ----------------------------------------------------------------------------
# Tiling policy: biggest lane-dense tile that fits a conservative VMEM budget
# ----------------------------------------------------------------------------
def _choose_tiles(batch: int, flat: int, itemsize: int,
                  vmem_budget_bytes: int = 16 * 1024 * 1024):
    # Batch tile: 8 sublane rows (or the whole batch if it is smaller).
    tile_b = batch if batch < 8 else 8
    # Live VMEM ~= 2*(x) + 2*(out) + 2*(bits) tiles of (tile_b, tile_f)
    #            + 2*(pe) rows of (1, tile_f).  Budget well under the 32 MiB
    # scoped default (and v7x's 64 MiB physical VMEM).
    bytes_per_lane = (6 * tile_b + 2) * itemsize
    max_f = max(128, vmem_budget_bytes // bytes_per_lane)
    if flat <= max_f:
        tile_f = flat                    # whole flattened row in one lane-dense block
    else:
        tile_f = (max_f // 128) * 128    # large multiple of 128; grid masks the tail
    return tile_b, tile_f


# ----------------------------------------------------------------------------
# Wrapper (forward pass of PositionalEncoding)
# ----------------------------------------------------------------------------
def positional_encoding_forward(
    x: jnp.ndarray,
    pe_table: jnp.ndarray,
    *,
    dropout_p: float = 0.1,
    training: bool = False,
    rng_key=None,
) -> jnp.ndarray:
    """x: (batch, seq, d_model); pe_table: (max_len, d_model)."""
    batch, seq, d_model = x.shape
    flat = seq * d_model

    pe_slice = pe_table[:seq, :]
    if pe_slice.dtype != x.dtype:
        # Prefer caching pe_table in the compute dtype (see make_positional_encoding_table).
        pe_slice = pe_slice.astype(x.dtype)

    # Lane-dense layout: last dim becomes seq*d_model (>= multiple of 128 for
    # realistic shapes) instead of a possibly-narrow d_model.
    x2d = x.reshape(batch, flat)
    pe2d = pe_slice.reshape(1, flat)

    itemsize = jnp.dtype(x.dtype).itemsize
    tile_b, tile_f = _choose_tiles(batch, flat, itemsize)

    grid = (pl.cdiv(batch, tile_b), pl.cdiv(flat, tile_f))
    x_spec = pl.BlockSpec((tile_b, tile_f), lambda bi, fi: (bi, fi))
    pe_spec = pl.BlockSpec((1, tile_f), lambda bi, fi: (0, fi))
    out_shape = jax.ShapeDtypeStruct((batch, flat), x.dtype)

    compiler_params = pltpu.CompilerParams(
        # Both axes are fully independent -> shard across both TensorCores on v7x.
        dimension_semantics=("parallel", "parallel"),
        vmem_limit_bytes=32 * 1024 * 1024,
    )

    if (not training) or dropout_p == 0.0:
        out2d = pl.pallas_call(
            _pe_add_kernel,
            out_shape=out_shape,
            grid=grid,
            in_specs=[x_spec, pe_spec],
            out_specs=x_spec,
            compiler_params=compiler_params,
            input_output_aliases={0: 0},     # out aliases x (elementwise x += pe)
        )(x2d, pe2d)
        return out2d.reshape(batch, seq, d_model)

    # ---- training path: fused add + inverted dropout ----
    if rng_key is None:
        rng_key = jax.random.PRNGKey(0)
    bits = jax.random.bits(rng_key, (batch, flat), dtype=jnp.uint32)

    p = float(dropout_p)
    threshold = min(int(round(p * (2 ** 32))), 2 ** 32 - 1)
    scale = 1.0 / (1.0 - p)

    kernel = functools.partial(_pe_add_dropout_kernel, threshold=threshold, scale=scale)
    out2d = pl.pallas_call(
        kernel,
        out_shape=out_shape,
        grid=grid,
        in_specs=[x_spec, pe_spec, x_spec],   # bits uses the same tiling as x
        out_specs=x_spec,
        compiler_params=compiler_params,
        input_output_aliases={0: 0},
    )(x2d, pe2d, bits)
    return out2d.reshape(batch, seq, d_model)


# ----------------------------------------------------------------------------
# Demo / self-test
# ----------------------------------------------------------------------------
if __name__ == "__main__":
    d_model = 32
    max_len = 64          # small synthetic max_len (module default is 5000)
    batch, seq = 2, 8

    key = jax.random.PRNGKey(0)
    x = jax.random.normal(key, (batch, seq, d_model), dtype=jnp.float32)

    pe_table = make_positional_encoding_table(d_model, max_len, dtype=x.dtype)

    # Inference / eval semantics (dropout is identity), deterministic.
    out = positional_encoding_forward(x, pe_table, dropout_p=0.1, training=False)
    out = jax.block_until_ready(out)

    # Pure-JAX reference check.
    ref = x + pe_table[None, :seq, :]
    assert out.shape == (batch, seq, d_model)
    assert jnp.allclose(out, ref, atol=1e-6, rtol=1e-6), "mismatch vs reference"

    # Training (dropout) path: every element is either 0 or (x + pe) / (1 - p).
    p = 0.1
    out_train = positional_encoding_forward(
        x, pe_table, dropout_p=p, training=True, rng_key=jax.random.PRNGKey(123)
    )
    out_train = jax.block_until_ready(out_train)
    assert out_train.shape == (batch, seq, d_model)
    scaled_ref = ref / (1.0 - p)
    ok = jnp.logical_or(
        jnp.isclose(out_train, 0.0),
        jnp.isclose(out_train, scaled_ref, atol=1e-5, rtol=1e-5),
    )
    assert bool(jnp.all(ok)), "dropout output must be 0 or scaled (x + pe)"

    print("KERNEL_OK")
</pallas_src>

<mosaic_0001>
module attributes {stable_mosaic.version = 11 : i64} {
  func.func @_pe_add_kernel(%arg0: i32, %arg1: i32, %arg2: memref<2x256xf32, #tpu.memory_space<vmem>>, %arg3: memref<1x256xf32, #tpu.memory_space<vmem>>, %arg4: memref<2x256xf32, #tpu.memory_space<vmem>>) attributes {dimension_semantics = [#tpu.dimension_semantics<parallel>, #tpu.dimension_semantics<parallel>], iteration_bounds = array<i64: 1, 1>, scalar_prefetch = 0 : i64, scratch_operands = 0 : i64, tpu.core_type = #tpu.core_type<tc>, window_params = [{transform_indices = @transform_0, window_bounds = array<i64: 2, 256>}, {transform_indices = @transform_1, window_bounds = array<i64: 1, 256>}, {transform_indices = @transform_2, window_bounds = array<i64: 2, 256>}]} {
    %c0 = arith.constant 0 : index
    %c0_0 = arith.constant 0 : index
    %0 = vector.load %arg2[%c0, %c0_0] : memref<2x256xf32, #tpu.memory_space<vmem>>, vector<2x256xf32>
    %c0_1 = arith.constant 0 : index
    %c0_2 = arith.constant 0 : index
    %1 = vector.load %arg3[%c0_1, %c0_2] : memref<1x256xf32, #tpu.memory_space<vmem>>, vector<1x256xf32>
    %2 = vector.broadcast %1 : vector<1x256xf32> to vector<2x256xf32>
    %3 = arith.addf %0, %2 : vector<2x256xf32>
    %c0_3 = arith.constant 0 : index
    %c0_4 = arith.constant 0 : index
    %4 = vector.load %arg4[%c0_3, %c0_4] : memref<2x256xf32, #tpu.memory_space<vmem>>, vector<2x256xf32>
    tpu.vector_store %arg4[%c0_3, %c0_4], %3 {strides = array<i32>} : memref<2x256xf32, #tpu.memory_space<vmem>>, vector<2x256xf32>,
    return
  }
  func.func @transform_0(%arg0: i32, %arg1: i32) -> (i32, i32) {
    %c0_i32 = arith.constant 0 : i32
    return %arg0, %arg1 : i32, i32
  }
  func.func @transform_1(%arg0: i32, %arg1: i32) -> (i32, i32) {
    %c0_i32 = arith.constant 0 : i32
    %c0_i32_0 = arith.constant 0 : i32
    return %c0_i32, %arg1 : i32, i32
  }
  func.func @transform_2(%arg0: i32, %arg1: i32) -> (i32, i32) {
    %c0_i32 = arith.constant 0 : i32
    return %arg0, %arg1 : i32, i32
  }
}

</mosaic_0001>

<bundles_post_ra>
// kernel: tpu_custom_call.1
= control target key start
LH: loop header
LB: loop body
LE: loop exit
PB: predicated region body
PF: predicated region fallthrough
CT: control target
= control target key end

     0   :  { %7 = vsyncpa [#allocation3], 0  ;;  %s134_s0 = inlined_call_operand.hbm [shape: f32[2,256], index: 0, kind: input, shape index: {}, may-alias: {0,2}]   ;;  %s135_s1 = inlined_call_operand.vmem [shape: f32[1,256], index: 1, kind: input, shape index: {}]   ;;  %s136_s2 = inlined_call_operand.hbm [shape: f32[2,256], index: 2, kind: output, shape index: {}, may-alias: {0,2}]  }
   0x1   :  { %8 = vsyncpa [#allocation4], 0  ;;  %s14_s11 = sshll.u32 %s134_s0, 4  ;;  %s108_s12 = smov [#allocation2]   ;;  %s15_s11 = int_to_ptr.hbm [resolvable:$true] %s14_s11 }
   0x2   :  { %s16_s13 = sshll.u32 %s108_s12, 4  ;;  %s17_s13 = int_to_ptr.vmem [resolvable:$true] %s16_s13 }
   0x3   :  { %19 = dma.hbm_to_vmem [thread:$0]  %s15_s11, 64, %s17_s13, [#allocation3]  }
   0x4   :  { %104 = dma.done.wait [#allocation3], 64  }
   0x5   :  { %105 = vsyncadd [#allocation3], 4294967232  ;;  %v27_v0 = vld [vmem:[%s135_s1] sm:$0x3]  ;;  %vm32_vm0 = vcmask 1041408   ;;  %s109_s16 = smov [#allocation5]  }
   0x6   :  { %v29_v1 = vperm.slane %v27_v0, 0  ;;  %v30_v2 = vperm.slane %v27_v0, 1  ;;  %v26_v3 = vld [vmem:[#allocation2] sm:$0xf]  ;;  %s42_s17 = sshll.u32 %s109_s16, 4  ;;  %s44_s19 = sshll.u32 %s136_s2, 4  ;;  %s43_s17 = int_to_ptr.vmem [resolvable:$true] %s42_s17  ;;  %s45_s19 = int_to_ptr.hbm [resolvable:$true] %s44_s19 }
   0x8   :  { %v31_v4 = vrot.slane %v30_v2, 6 }
   0xa   :  { %v33_v5 = vsel %vm32_vm0, %v29_v1, %v31_v4 }
   0xb   :  { %v35_v6 = vadd.f32 %v33_v5, %v26_v3 }
   0xd   :  { %36 = vst [vmem:[#allocation5] sm:$0xf] %v35_v6 }
   0xe   :  { %47 = dma.vmem_to_hbm [thread:$0]  %s43_s17, 64, %s45_s19, [#allocation4]  }
   0xf   :  { %106 = dma.done.wait [#allocation4], 64  }
  0x10   :  { %107 = vsyncadd [#allocation4], 4294967232 }
  0x11   :  { %52 = vsyncpa [#allocation3], 1 }
  0x12   :  { %53 = vsyncpa [#allocation4], 1 }

</bundles_post_ra>
